<compile_context>
chip_gen: v6e
topology: v6e:2x2x1
jax: 0.10.0
libtpu: 0.0.40
codegen_flags: <defaults>
</compile_context>

<pallas_src>
import functools

import jax
import jax.numpy as jnp
from jax import lax
from jax.experimental import pallas as pl
from jax.experimental.pallas import tpu as pltpu


def _rup(v, m):
    return ((v + m - 1) // m) * m


def attention_kernel(x_ref, w1_ref, b1_ref, w2_ref, b2_ref, o_ref, s_ref, *,
                     chunk_b, mxu_dtype):
    TB, L, D = x_ref.shape
    b2 = b2_ref[0, 0]

    # Hoisted (per grid step) casts of the resident weights for the MXU.
    w1m = w1_ref[...].astype(mxu_dtype)
    w2m = w2_ref[...].astype(mxu_dtype)

    def score_block(b0, nb):
        # (nb, L, D) -> (nb*L, D): layout-preserving when L % 8 == 0 (f32 sublane
        # tile); for other L it costs one in-VMEM relayout per chunk but stays
        # correct.
        xc = x_ref[pl.ds(b0, nb)].reshape(nb * L, D).astype(mxu_dtype)
        h = jnp.dot(xc, w1m, preferred_element_type=jnp.float32)
        h = jnp.maximum(h + b1_ref[...], 0.0)                       # (nb*L, H) f32
        # Width-1 Linear2 as an N=1 MXU matmul (MXU is pure slack here).
        sc = jnp.dot(h.astype(mxu_dtype), w2m,
                     preferred_element_type=jnp.float32) + b2       # (nb*L, 1)
        s_ref[pl.ds(b0, nb)] = sc.reshape(nb, L, 1)

    # Chunked score pass: only a (chunk_b*L, 128) hidden slice is ever live.
    n_full, rem = divmod(TB, chunk_b)
    if n_full == 1:
        score_block(0, chunk_b)
    elif n_full > 1:
        def body(c, carry):
            score_block(c * chunk_b, chunk_b)
            return carry
        lax.fori_loop(0, n_full, body, 0, unroll=n_full <= 8)
    if rem:
        score_block(n_full * chunk_b, rem)

    # Softmax over the sequence axis (dim=1 of the (B, L, 1) scores), stabilized;
    # exact division (no approx reciprocal) - free accuracy in this regime.
    s = s_ref[...]
    s = s - jnp.max(s, axis=1, keepdims=True)
    e = jnp.exp(s)
    w = e / jnp.sum(e, axis=1, keepdims=True)                       # (TB, L, 1)

    # weighted features + residual:  w * x + x  ==  (w + 1) * x
    o_ref[...] = ((w + 1.0) * x_ref[...]).astype(o_ref.dtype)


def _choose_tb(B, per_batch_bytes, target_tile_bytes,
               min_tile_bytes=512 * 1024, min_steps=4):
    """Batches per grid step: aim for ~target_tile_bytes of streamed x per step
    (amortizes the ~0.35us/step pipeline overhead), but prefer >= min_steps grid
    steps (>= 2 per TensorCore on v7x) as long as tiles stay >= min_tile_bytes."""
    tb = int(max(1, min(B, target_tile_bytes // max(per_batch_bytes, 1))))
    steps = -(-B // tb)
    if steps < min_steps and B > 1:
        for want in range(min_steps, 1, -1):           # try 4, 3, 2 steps
            tb_alt = -(-B // want)
            if 1 <= tb_alt < B and tb_alt * per_batch_bytes >= min_tile_bytes:
                return tb_alt
    return tb


def _choose_chunk_b(tb, L, H, h_budget_bytes=2 * 1024 * 1024):
    """Batches per inner score chunk so the live hidden slab stays ~<= 2 MiB."""
    per_batch_h = 2 * _rup(L, 8) * _rup(H, 128) * 4    # matmul out + ReLU temp (f32)
    return int(max(1, min(tb, h_budget_bytes // max(per_batch_h, 1))))


def attention_forward(x, w1, b1, w2, b2, *, target_tile_bytes=None,
                      use_bf16_matmul=False):
    """x: (B, L, D); w1: (D, H); b1: (1, H) or (H,); w2: (H, 1) or (H,); b2 scalar-like.

    use_bf16_matmul: cast MXU inputs to bf16 (f32 accumulation). Mainly worth it
    on v5e where f32 MXU matmul is emulated with multiple bf16 passes.
    """
    B, L, D = x.shape
    H = w1.shape[1]
    b1 = jnp.asarray(b1).reshape(1, H)
    w2 = jnp.asarray(w2).reshape(H, 1)
    b2 = jnp.asarray(b2).reshape(1, 1)

    itemsize = jnp.dtype(x.dtype).itemsize
    sub = 8 * max(1, 4 // itemsize)                    # sublane tile: f32->8, bf16->16
    per_batch_x = _rup(L, sub) * _rup(D, 128) * itemsize   # one VMEM copy of one batch

    # Hardware query: physical VMEM sets the limit cap and the tile-size target.
    try:
        phys_vmem = int(pltpu.get_tpu_info().vmem_capacity_bytes)
    except Exception:
        phys_vmem = 64 * 1024 * 1024                   # conservative: v7x per-TC VMEM
    vmem_cap = (phys_vmem * 3) // 4

    if target_tile_bytes is None:
        # v5e/v6e (128 MiB VMEM): 8 MiB x tile; v7x (64 MiB/TC): 4 MiB.
        target_tile_bytes = (8 if phys_vmem >= 96 * 1024 * 1024 else 4) * 1024 * 1024

    tb = _choose_tb(B, per_batch_x, target_tile_bytes)
    chunk_b = _choose_chunk_b(tb, L, H)

    def vmem_needed(tb_, cb_):
        x_io = 4 * tb_ * per_batch_x                             # in + out, double-buffered
        scores = tb_ * _rup(L, 8) * 128 * 4                      # (tb, L, 1) f32 scratch
        h_chunk = 2 * _rup(cb_ * L, 8) * _rup(H, 128) * 4        # live hidden slab (f32)
        weights = 2 * (_rup(D, 8) * _rup(H, 128)
                       + 8 * _rup(H, 128) + _rup(H, 8) * 128) * 4
        return x_io + scores + h_chunk + weights + (2 << 20)     # + headroom

    # Shrink the tile until the full budget (including the chunked hidden slab)
    # fits the per-generation VMEM cap.
    while tb > 1 and vmem_needed(tb, chunk_b) > vmem_cap:
        tb = max(1, tb // 2)
        chunk_b = _choose_chunk_b(tb, L, H)

    grid = ((B + tb - 1) // tb,)   # ragged last block ok: softmax is per-batch.
    vmem_limit = int(min(max(vmem_needed(tb, chunk_b), 16 * 1024 * 1024), vmem_cap))

    mxu_dtype = jnp.bfloat16 if use_bf16_matmul else x.dtype
    kernel = functools.partial(attention_kernel, chunk_b=chunk_b, mxu_dtype=mxu_dtype)

    # TODO(synk): when D % 128 != 0 but L*D % 128 == 0, stream a lane-dense
    # (tb, L*D) slab (relayout in-VMEM only for the matmul operand) to avoid
    # lane-padded VMEM tiles and masked output stores.
    # TODO(synk): for huge per-batch L*D that cannot fit even at tb=1, switch to
    # an L-tiled two-sweep (score pass into a resident (L,1) scratch, softmax,
    # then weighted+residual pass).

    return pl.pallas_call(
        kernel,
        out_shape=jax.ShapeDtypeStruct((B, L, D), x.dtype),
        grid_spec=pltpu.PrefetchScalarGridSpec(
            num_scalar_prefetch=0,
            grid=grid,
            in_specs=[
                pl.BlockSpec((tb, L, D), lambda b: (b, 0, 0)),       # x (streamed)
                pl.BlockSpec((D, H), lambda b: (0, 0)),              # W1 (resident)
                pl.BlockSpec((1, H), lambda b: (0, 0)),              # b1
                pl.BlockSpec((H, 1), lambda b: (0, 0)),              # W2
                pl.BlockSpec(memory_space=pltpu.MemorySpace.SMEM),   # b2 scalar
            ],
            out_specs=pl.BlockSpec((tb, L, D), lambda b: (b, 0, 0)),
            scratch_shapes=[pltpu.VMEM((tb, L, 1), jnp.float32)],    # per-step scores
        ),
        compiler_params=pltpu.CompilerParams(
            dimension_semantics=("parallel",),
            vmem_limit_bytes=vmem_limit,
        ),
    )(x, w1, b1, w2, b2)


def init_params(key, input_dim, hidden=128):
    # Deterministic init mimicking torch.nn.Linear default (uniform +-1/sqrt(fan_in)).
    k1, k2, k3, k4 = jax.random.split(key, 4)
    lim1 = 1.0 / jnp.sqrt(jnp.float32(input_dim))
    lim2 = 1.0 / jnp.sqrt(jnp.float32(hidden))
    w1 = jax.random.uniform(k1, (input_dim, hidden), jnp.float32, -lim1, lim1)
    b1 = jax.random.uniform(k2, (1, hidden), jnp.float32, -lim1, lim1)
    w2 = jax.random.uniform(k3, (hidden, 1), jnp.float32, -lim2, lim2)
    b2 = jax.random.uniform(k4, (1, 1), jnp.float32, -lim2, lim2)
    return w1, b1, w2, b2


def attention_ref(x, w1, b1, w2, b2):
    # Pure-JAX reference matching the PyTorch forward (including the residual).
    h = jnp.maximum(
        jnp.einsum("bld,dh->blh", x, w1, precision="highest") + b1.reshape(1, 1, -1),
        0.0)
    s = jnp.einsum("blh,ho->blo", h, w2, precision="highest") + b2.reshape(1, 1, 1)
    w = jax.nn.softmax(s, axis=1)
    return w * x + x


if __name__ == "__main__":
    B, L, D = 2, 8, 32   # batch, sequence length, input_dim
    key = jax.random.PRNGKey(0)
    kx, kp = jax.random.split(key)
    x = jax.random.normal(kx, (B, L, D), jnp.float32)
    w1, b1, w2, b2 = init_params(kp, D)

    out = jax.block_until_ready(attention_forward(x, w1, b1, w2, b2))
    ref = attention_ref(x, w1, b1, w2, b2)

    assert out.shape == (B, L, D)
    err = float(jnp.max(jnp.abs(out - ref)))
    # Exact softmax division + f32 MXU accumulation -> tight tolerance.
    assert jnp.allclose(out, ref, atol=1e-4, rtol=1e-4), f"max abs err {err}"
    print("KERNEL_OK")
</pallas_src>

<mosaic_0001>
module attributes {stable_mosaic.version = 11 : i64} {
  func.func @attention_kernel(%arg0: i32, %arg1: memref<2x8x32xf32, #tpu.memory_space<vmem>>, %arg2: memref<32x128xf32, #tpu.memory_space<vmem>>, %arg3: memref<1x128xf32, #tpu.memory_space<vmem>>, %arg4: memref<128x1xf32, #tpu.memory_space<vmem>>, %arg5: memref<1x1xf32, #tpu.memory_space<smem>>, %arg6: memref<2x8x32xf32, #tpu.memory_space<vmem>>, %arg7: memref<2x8x1xf32, #tpu.memory_space<vmem>>) attributes {dimension_semantics = [#tpu.dimension_semantics<parallel>], iteration_bounds = array<i64: 1>, scalar_prefetch = 0 : i64, scratch_operands = 1 : i64, tpu.core_type = #tpu.core_type<tc>, window_params = [{transform_indices = @transform_0, window_bounds = array<i64: 2, 8, 32>}, {pipeline_mode = #tpu.pipeline_mode<synchronous>, transform_indices = @transform_1, window_bounds = array<i64: 32, 128>}, {pipeline_mode = #tpu.pipeline_mode<synchronous>, transform_indices = @transform_2, window_bounds = array<i64: 1, 128>}, {pipeline_mode = #tpu.pipeline_mode<synchronous>, transform_indices = @transform_3, window_bounds = array<i64: 128, 1>}, {transform_indices = @transform_4, window_bounds = array<i64: 1, 1>}, {transform_indices = @transform_5, window_bounds = array<i64: 2, 8, 32>}]} {
    %c0 = arith.constant 0 : index
    %c0_0 = arith.constant 0 : index
    %0 = memref.load %arg5[%c0, %c0_0] : memref<1x1xf32, #tpu.memory_space<smem>>
    %c0_1 = arith.constant 0 : index
    %c0_2 = arith.constant 0 : index
    %1 = vector.load %arg2[%c0_1, %c0_2] : memref<32x128xf32, #tpu.memory_space<vmem>>, vector<32x128xf32>
    %c0_3 = arith.constant 0 : index
    %c0_4 = arith.constant 0 : index
    %2 = vector.load %arg4[%c0_3, %c0_4] : memref<128x1xf32, #tpu.memory_space<vmem>>, vector<128x1xf32>
    %c0_5 = arith.constant 0 : index
    %c0_6 = arith.constant 0 : index
    %c0_7 = arith.constant 0 : index
    %3 = vector.load %arg1[%c0_5, %c0_6, %c0_7] : memref<2x8x32xf32, #tpu.memory_space<vmem>>, vector<2x8x32xf32>
    %4 = vector.shape_cast %3 : vector<2x8x32xf32> to vector<16x32xf32>
    %cst = arith.constant dense<0.000000e+00> : vector<16x128xf32>
    %5 = tpu.matmul %4, %1, %cst {dimension_numbers = #tpu.dot_dimension_numbers<[1], [0], [0], [1], [0, 0, 1, 1], [], []>} : vector<16x32xf32>, vector<32x128xf32>, vector<16x128xf32> -> vector<16x128xf32>
    %c0_8 = arith.constant 0 : index
    %c0_9 = arith.constant 0 : index
    %6 = vector.load %arg3[%c0_8, %c0_9] : memref<1x128xf32, #tpu.memory_space<vmem>>, vector<1x128xf32>
    %7 = vector.broadcast %6 : vector<1x128xf32> to vector<16x128xf32>
    %8 = arith.addf %5, %7 : vector<16x128xf32>
    %cst_10 = arith.constant 0.000000e+00 : f32
    %9 = vector.broadcast %cst_10 : f32 to vector<16x128xf32>
    %10 = arith.maximumf %8, %9 : vector<16x128xf32>
    %cst_11 = arith.constant dense<0.000000e+00> : vector<16x1xf32>
    %11 = tpu.matmul %10, %2, %cst_11 {dimension_numbers = #tpu.dot_dimension_numbers<[1], [0], [0], [1], [0, 0, 1, 1], [], []>} : vector<16x128xf32>, vector<128x1xf32>, vector<16x1xf32> -> vector<16x1xf32>
    %12 = vector.broadcast %0 : f32 to vector<16x1xf32>
    %13 = arith.addf %11, %12 : vector<16x1xf32>
    %14 = vector.shape_cast %13 : vector<16x1xf32> to vector<2x8x1xf32>
    %c0_12 = arith.constant 0 : index
    %c0_13 = arith.constant 0 : index
    %c0_14 = arith.constant 0 : index
    %15 = vector.load %arg7[%c0_12, %c0_13, %c0_14] : memref<2x8x1xf32, #tpu.memory_space<vmem>>, vector<2x8x1xf32>
    tpu.vector_store %arg7[%c0_12, %c0_13, %c0_14], %14 {strides = array<i32>} : memref<2x8x1xf32, #tpu.memory_space<vmem>>, vector<2x8x1xf32>,
    %c0_15 = arith.constant 0 : index
    %c0_16 = arith.constant 0 : index
    %c0_17 = arith.constant 0 : index
    %16 = vector.load %arg7[%c0_15, %c0_16, %c0_17] : memref<2x8x1xf32, #tpu.memory_space<vmem>>, vector<2x8x1xf32>
    %cst_18 = arith.constant dense<0xFF800000> : vector<2x1xf32>
    %17 = vector.multi_reduction <maximumf>, %16, %cst_18 [1] : vector<2x8x1xf32> to vector<2x1xf32>
    %18 = vector.shape_cast %17 : vector<2x1xf32> to vector<2x1x1xf32>
    %19 = vector.broadcast %18 : vector<2x1x1xf32> to vector<2x8x1xf32>
    %20 = arith.subf %16, %19 : vector<2x8x1xf32>
    %21 = math.exp %20 : vector<2x8x1xf32>
    %cst_19 = arith.constant dense<0.000000e+00> : vector<2x1xf32>
    %22 = vector.multi_reduction <add>, %21, %cst_19 [1] : vector<2x8x1xf32> to vector<2x1xf32>
    %23 = vector.shape_cast %22 : vector<2x1xf32> to vector<2x1x1xf32>
    %24 = vector.broadcast %23 : vector<2x1x1xf32> to vector<2x8x1xf32>
    %25 = arith.divf %21, %24 : vector<2x8x1xf32>
    %cst_20 = arith.constant 1.000000e+00 : f32
    %26 = vector.broadcast %cst_20 : f32 to vector<2x8x1xf32>
    %27 = arith.addf %25, %26 : vector<2x8x1xf32>
    %c0_21 = arith.constant 0 : index
    %c0_22 = arith.constant 0 : index
    %c0_23 = arith.constant 0 : index
    %28 = vector.load %arg1[%c0_21, %c0_22, %c0_23] : memref<2x8x32xf32, #tpu.memory_space<vmem>>, vector<2x8x32xf32>
    %29 = vector.broadcast %27 : vector<2x8x1xf32> to vector<2x8x32xf32>
    %30 = arith.mulf %29, %28 : vector<2x8x32xf32>
    %c0_24 = arith.constant 0 : index
    %c0_25 = arith.constant 0 : index
    %c0_26 = arith.constant 0 : index
    %31 = vector.load %arg6[%c0_24, %c0_25, %c0_26] : memref<2x8x32xf32, #tpu.memory_space<vmem>>, vector<2x8x32xf32>
    tpu.vector_store %arg6[%c0_24, %c0_25, %c0_26], %30 {strides = array<i32>} : memref<2x8x32xf32, #tpu.memory_space<vmem>>, vector<2x8x32xf32>,
    return
  }
  func.func @transform_0(%arg0: i32) -> (i32, i32, i32) {
    %c0_i32 = arith.constant 0 : i32
    %c0_i32_0 = arith.constant 0 : i32
    %c0_i32_1 = arith.constant 0 : i32
    return %arg0, %c0_i32, %c0_i32_0 : i32, i32, i32
  }
  func.func @transform_1(%arg0: i32) -> (i32, i32) {
    %c0_i32 = arith.constant 0 : i32
    %c0_i32_0 = arith.constant 0 : i32
    %c0_i32_1 = arith.constant 0 : i32
    return %c0_i32, %c0_i32_0 : i32, i32
  }
  func.func @transform_2(%arg0: i32) -> (i32, i32) {
    %c0_i32 = arith.constant 0 : i32
    %c0_i32_0 = arith.constant 0 : i32
    %c0_i32_1 = arith.constant 0 : i32
    return %c0_i32, %c0_i32_0 : i32, i32
  }
  func.func @transform_3(%arg0: i32) -> (i32, i32) {
    %c0_i32 = arith.constant 0 : i32
    %c0_i32_0 = arith.constant 0 : i32
    %c0_i32_1 = arith.constant 0 : i32
    return %c0_i32, %c0_i32_0 : i32, i32
  }
  func.func @transform_4(%arg0: i32) -> (i32, i32) {
    %c0_i32 = arith.constant 0 : i32
    %c0_i32_0 = arith.constant 0 : i32
    %c0_i32_1 = arith.constant 0 : i32
    return %c0_i32, %c0_i32_0 : i32, i32
  }
  func.func @transform_5(%arg0: i32) -> (i32, i32, i32) {
    %c0_i32 = arith.constant 0 : i32
    %c0_i32_0 = arith.constant 0 : i32
    %c0_i32_1 = arith.constant 0 : i32
    return %arg0, %c0_i32, %c0_i32_0 : i32, i32, i32
  }
}

</mosaic_0001>

<bundles_post_ra>
// kernel: tpu_custom_call.1
= control target key start
LH: loop header
LB: loop body
LE: loop exit
PB: predicated region body
PF: predicated region fallthrough
CT: control target
= control target key end

     0   :  { %vm52_vm0 = vcmask 261120   ;;  %s524_s0 = inlined_call_operand.vmem [shape: f32[2,8,32], index: 0, kind: input, shape index: {}]   ;;  %s525_s1 = inlined_call_operand.vmem [shape: f32[32,128], index: 1, kind: input, shape index: {}]   ;;  %s526_s2 = inlined_call_operand.vmem [shape: f32[1,128], index: 2, kind: input, shape index: {}]   ;;  %s527_s3 = inlined_call_operand.vmem [shape: f32[128,1], index: 3, kind: input, shape index: {}]   ;;  %s528_s4 = inlined_call_operand.<no memory space> [shape: f32[1,1], index: 4, kind: input, shape index: {}]   ;;  %s529_s5 = inlined_call_operand.hbm [shape: f32[2,8,32], index: 5, kind: output, shape index: {}]  }
   0x1   :  { %v26_v0 = vld [vmem:[%s525_s1 + $0x18] sm:$0xff]  ;;  %v25_v1 = vld [vmem:[%s525_s1 + $0x10] sm:$0xff]  ;;  %v440_v2 = vld [vmem:[%s524_s0] sm:$0xff] }
   0x2   :  { %316 = vmatprep.subr.mxu0 %v26_v0  ;;  %v24_v3 = vld [vmem:[%s525_s1 + $0x8] sm:$0xff]  ;;  %324 = vmatprep.mubr.msk.f32.mxu0 %vm52_vm0, %v440_v2  ;;  %v42_v4 = vld [vmem:[%s527_s3 + $0x78] sm:$0xff]  ;;  %v41_v5 = vld [vmem:[%s527_s3 + $0x70] sm:$0xff] }
   0x3   :  { %317 = vmatpush3.msra.mxu0 %v26_v0  ;;  %327 = vmatprep.subr.mxu1 %v42_v4  ;;  %v23_v6 = vld [vmem:[%s525_s1] sm:$0xff]  ;;  %v40_v7 = vld [vmem:[%s527_s3 + $0x68] sm:$0xff] }
   0x4   :  { %318 = vmatprep.subr.mxu0 %v25_v1  ;;  %328 = vmatpush3.msra.mxu1 %v42_v4  ;;  %v462_v8 = vld [vmem:[%s524_s0 + $0x8] sm:$0xff]  ;;  %v39_v9 = vld [vmem:[%s527_s3 + $0x60] sm:$0xff] }
   0x5   :  { %319 = vmatpush3.msra.mxu0 %v25_v1  ;;  %329 = vmatprep.subr.mxu1 %v41_v5 }
   0x6   :  { %320 = vmatprep.subr.mxu0 %v24_v3  ;;  %330 = vmatpush3.msra.mxu1 %v41_v5 }
   0x7   :  { %321 = vmatpush3.msra.mxu0 %v24_v3 }
   0x8   :  { %11 = vsyncpa [#allocation5], 0  ;;  %322 = vmatprep.subr.mxu0 %v23_v6  ;;  %331 = vmatprep.subr.mxu1 %v40_v7  ;;  %v38_v10 = vld [vmem:[%s527_s3 + $0x58] sm:$0xff]  ;;  %v37_v11 = vld [vmem:[%s527_s3 + $0x50] sm:$0xff]  ;;  %v397_v29 = vmov 0   ;;  %v136_v30 = vstv %s528_s4  ;;  %vm212_vm1 = vcmask 7168  }
   0x9   :  { %323 = vmatpush3.msra.mxu0 %v23_v6  ;;  %332 = vmatpush3.msra.mxu1 %v40_v7  ;;  %v36_v12 = vld [vmem:[%s527_s3 + $0x48] sm:$0xff]  ;;  %v35_v13 = vld [vmem:[%s527_s3 + $0x40] sm:$0xff]  ;;  %v34_v14 = vld [vmem:[%s527_s3 + $0x38] sm:$0xff] }
   0xa   :  { %325 = vmatmul.mubr.msk.f32.vlgmr.msra.gmra.mxu0 %vm52_vm0, %v462_v8  ;;  %333 = vmatprep.subr.mxu1 %v39_v9  ;;  %v33_v15 = vld [vmem:[%s527_s3 + $0x30] sm:$0xff]  ;;  %v32_v16 = vld [vmem:[%s527_s3 + $0x28] sm:$0xff]  ;;  %v31_v17 = vld [vmem:[%s527_s3 + $0x20] sm:$0xff] }
   0xb   :  { %334 = vmatpush3.msra.mxu1 %v39_v9  ;;  %v30_v18 = vld [vmem:[%s527_s3 + $0x18] sm:$0xff]  ;;  %v29_v19 = vld [vmem:[%s527_s3 + $0x10] sm:$0xff]  ;;  %v28_v20 = vld [vmem:[%s527_s3 + $0x8] sm:$0xff]  ;;  %366 = vset.pattern.permute.xlu0 %v397_v29 }
   0xc   :  { %335 = vmatprep.subr.mxu1 %v38_v10  ;;  %v27_v21 = vld [vmem:[%s527_s3] sm:$0xff] }
   0xd   :  { %336 = vmatpush3.msra.mxu1 %v38_v10  ;;  %v289_v22 = vld [vmem:[%s526_s2] ss:$0 sm:$0xff]  ;;  %s398_s2 = smov [#allocation4]  }
   0xe   :  { %337 = vmatprep.subr.mxu1 %v37_v11  ;;  %s278_s4 = sshll.u32 %s398_s2, 4  ;;  %s279_s4 = int_to_ptr.vmem [resolvable:$true] %s278_s4 }
   0xf   :  { %338 = vmatpush3.msra.mxu1 %v37_v11  ;;  %s375_s1 = scalar_lea.vmem %s279_s4, 256  ;;  %p380_p1 = scmp.lt.s32.totalorder %s279_s4, %s279_s4 }
  0x10   :  { %339 = vmatprep.subr.mxu1 %v36_v12  ;;  %p376_p0 = scmp.ne.s32.totalorder %s279_s4, %s375_s1  ;;  %p381_p2 = scmp.lt.s32.totalorder %s375_s1, %s375_s1 }
  0x11   :  { %340 = vmatpush3.msra.mxu1 %v36_v12 }
  0x12   :  { %341 = vmatprep.subr.mxu1 %v35_v13  ;;  %p382_p3 = por %p381_p2, %p380_p1 }
  0x13   :  { %342 = vmatpush3.msra.mxu1 %v35_v13 }
  0x14   :  { %343 = vmatprep.subr.mxu1 %v34_v14  ;;  %p383_p4 = pnand %p382_p3, %p376_p0 }
  0x15   :  { %344 = vmatpush3.msra.mxu1 %v34_v14 }
  0x16   :  { %345 = vmatprep.subr.mxu1 %v33_v15 }
  0x17   :  { %346 = vmatpush3.msra.mxu1 %v33_v15 }
  0x18   :  { %347 = vmatprep.subr.mxu1 %v32_v16 }
  0x19   :  { %348 = vmatpush3.msra.mxu1 %v32_v16 }
  0x1a   :  { %349 = vmatprep.subr.mxu1 %v31_v17 }
  0x1b   :  { %350 = vmatpush3.msra.mxu1 %v31_v17 }
  0x1c   :  { %351 = vmatprep.subr.mxu1 %v30_v18 }
  0x1d   :  { %352 = vmatpush3.msra.mxu1 %v30_v18 }
  0x1e   :  { %353 = vmatprep.subr.mxu1 %v29_v19 }
  0x1f   :  { %354 = vmatpush3.msra.mxu1 %v29_v19 }
  0x20   :  { %355 = vmatprep.subr.mxu1 %v28_v20 }
  0x21   :  { %356 = vmatpush3.msra.mxu1 %v28_v20 }
  0x22   :  { %357 = vmatprep.subr.mxu1 %v27_v21 }
  0x23   :  { %358 = vmatpush3.msra.mxu1 %v27_v21 }
  0xca   :  { %v326_v23 = vpop.f32.mrf.mxu0 }
  0xcb   :  { %v131_v24 = vadd.f32 %v326_v23, %v289_v22 }
  0xcc   :  { %v125_v25 = vpop.f32.mrf.mxu0 }
  0xcd   :  { %v126_v26 = vadd.f32 %v289_v22, %v125_v25  ;;  %v135_v28 = vmax.f32 %v131_v24, 0.0 }
  0xcf   :  { %v134_v27 = vmax.f32 %v126_v26, 0.0 }
  0xd1   :  { %359 = vmatprep.mubr.f32.mxu1 %v134_v27 }
  0xd2   :  { %360 = vmatmul.mubr.f32.vlgmr.msra.gmra.mxu1 %v135_v28 }
 0x192   :  { %v361_v31 = vpop.f32.mrf.mxu1 }
 0x193   :  { %v209_v32 = vadd.f32 %v361_v31, %v136_v30 }
 0x194   :  { %v203_v33 = vpop.f32.mrf.mxu1 }
 0x195   :  { %214 = vst.msk [vmem:[#allocation2 + $0x8] sm:$0xff] %vm212_vm1, %v209_v32  ;;  %v204_v34 = vadd.f32 %v203_v33, %v136_v30 }
 0x197   :  { %213 = vst.msk [vmem:[#allocation2] sm:$0xff] %vm212_vm1, %v204_v34 }
 0x19c   :  { %v216_v35 = vld [vmem:[#allocation2 + $0x8] sm:$0xff] }
 0x19d   :  { %v224_v36 = vsel %vm212_vm1, %v216_v35, -inf }
 0x19e   :  { %v225_v37 = vrot.slane %v224_v36, 4  ;;  %v215_v38 = vld [vmem:[#allocation2] sm:$0xff] }
 0x19f   :  { %v217_v39 = vsel %vm212_vm1, %v215_v38, -inf }
 0x1a0   :  { %v226_v40 = vmax.f32 %v224_v36, %v225_v37  ;;  %v218_v41 = vrot.slane %v217_v39, 4 }
 0x1a2   :  { %v227_v42 = vrot.slane %v226_v40, 2  ;;  %v219_v43 = vmax.f32 %v217_v39, %v218_v41 }
 0x1a4   :  { %v220_v44 = vrot.slane %v219_v43, 2  ;;  %v228_v45 = vmax.f32 %v226_v40, %v227_v42 }
 0x1a6   :  { %v221_v46 = vmax.f32 %v219_v43, %v220_v44  ;;  %v229_v47 = vrot.slane %v228_v45, 1 }
 0x1a8   :  { %v222_v48 = vrot.slane %v221_v46, 1  ;;  %v230_v49 = vmax.f32 %v228_v45, %v229_v47 }
 0x1aa   :  { %v223_v50 = vmax.f32 %v221_v46, %v222_v48  ;;  %v232_v51 = vsub.f32 %v216_v35, %v230_v49 }
 0x1ac   :  { %v231_v52 = vsub.f32 %v215_v38, %v223_v50  ;;  %v235_v53 = vmul.f32 1.442695, %v232_v51 }
 0x1ae   :  { %v233_v54 = vmul.f32 1.442695, %v231_v52  ;;  %367 = vpow2.f32 %v235_v53 }
 0x1b0   :  { %369 = vpow2.f32 %v233_v54 }
 0x1bb   :  { %v368_v55 = vpop.eup %367 }
 0x1bc   :  { %v244_v56 = vsel %vm212_vm1, %v368_v55, 0.0 }
 0x1bd   :  { %v370_v57 = vpop.eup %369  ;;  %v245_v58 = vrot.slane %v244_v56, 4 }
 0x1be   :  { %v237_v59 = vsel %vm212_vm1, %v370_v57, 0.0 }
 0x1bf   :  { %v238_v60 = vrot.slane %v237_v59, 4  ;;  %v246_v61 = vadd.f32 %v245_v58, %v244_v56 }
 0x1c1   :  { %v239_v62 = vadd.f32 %v238_v60, %v237_v59  ;;  %v247_v63 = vrot.slane %v246_v61, 2 }
 0x1c3   :  { %v240_v0 = vrot.slane %v239_v62, 2  ;;  %v248_v1 = vadd.f32 %v247_v63, %v246_v61 }
 0x1c5   :  { %v241_v3 = vadd.f32 %v240_v0, %v239_v62  ;;  %v249_v4 = vrot.slane %v248_v1, 1 }
 0x1c7   :  { %v242_v5 = vrot.slane %v241_v3, 1  ;;  %v250_v6 = vadd.f32 %v249_v4, %v248_v1 }
 0x1c9   :  { %v243_v7 = vadd.f32 %v242_v5, %v241_v3  ;;  %371 = vrcp.f32 %v250_v6 }
 0x1cb   :  { %373 = vrcp.f32 %v243_v7 }
 0x1d6   :  { %v372_v9 = vpop.eup %371 }
 0x1d7   :  { %v254_v13 = vmul.f32 %v372_v9, %v368_v55 }
 0x1d8   :  { %v374_v10 = vpop.eup %373 }
 0x1d9   :  { %v252_v11 = vmul.f32 %v374_v10, %v370_v57  ;;  %v256_v14 = vadd.f32 1.0, %v254_v13 }
 0x1db   :  { %v255_v12 = vadd.f32 1.0, %v252_v11 }
 0x1dd   :  { %261 = vperm.xlu0 %366, %v255_v12  }
 0x1e1   :  { %266 = vperm.xlu0 %366, %v256_v14  }
 0x258   :  { %v262_v15 = vpop.permute.xlu0 %261 }
 0x259   :  { %v269_v16 = vmul.f32 %v262_v15, %v440_v2 }
 0x25b   :  { %271 = vst.msk [vmem:[#allocation4] sm:$0xff] %vm52_vm0, %v269_v16 }
 0x25c   :  { %v267_v17 = vpop.permute.xlu0 %266 }
 0x25d   :  { %v270_v18 = vmul.f32 %v267_v17, %v462_v8 }
 0x25f   :  { %272 = vst.msk [vmem:[#allocation4 + $0x8] sm:$0xff] %vm52_vm0, %v270_v18 }
 0x260   :  { %386 = shalt.err (!%p383_p4)
}
 0x261   :  { %s399_s13 = smov 128   ;;  %s400_s0 = smov 8  }
 0x262   :  { %284 = dma.vmem_to_hbm [thread:$0]  %s279_s4, 256, %s529_s5, [#allocation5], %s399_s13, %s399_s13, %s400_s0  }
 0x263   :  { %395 = dma.done.wait [#allocation5], 256  }
 0x264   :  { %396 = vsyncadd [#allocation5], 4294967040 }
 0x265   :  { %288 = vsyncpa [#allocation5], 1 }

</bundles_post_ra>
